<compile_context>
chip_gen: v6e
topology: v6e:2x2x1
jax: 0.10.0
libtpu: 0.0.40
codegen_flags: <defaults>
</compile_context>

<pallas_src>
import functools

import jax
import jax.numpy as jnp
from jax import lax
from jax.experimental import pallas as pl
from jax.experimental.pallas import tpu as pltpu


# ----------------------------------------------------------------------------
# In-kernel Mish: x * tanh(softplus(x)) with one exp + one approx reciprocal.
# ----------------------------------------------------------------------------
def _mish_kernel(x):
    u = jnp.exp(jnp.minimum(x, 20.0))            # e^x (clamped; ratio == 1 beyond)
    num = u * (u + 2.0)                          # e^2x + 2 e^x
    t = num * pl.reciprocal(num + 2.0, approx=True)
    return x * t


# ----------------------------------------------------------------------------
# Build the 9 reflect-padded 3x3 conv taps of a flattened (C, H*W) feature map
# and stage them into scratch rows [t*C : (t+1)*C] (tap order t = dy*3 + dx).
# Spatial shifts are lane shifts (jnp.roll); reflect boundaries are fixed with
# precomputed masks, so no padded image and no reshapes are needed.
# ----------------------------------------------------------------------------
def _im2col_reflect(col_ref, y, H, W):
    C, HW = y.shape
    lane = lax.broadcasted_iota(jnp.int32, (C, HW), 1)
    col0 = (lane % W) == 0
    colW1 = (lane % W) == (W - 1)
    row0 = lane < W
    rowH1 = lane >= (H - 1) * W

    left = jnp.roll(y, 1, axis=1)                # [p] = y[p-1]
    right = jnp.roll(y, -1, axis=1)              # [p] = y[p+1]
    c_shift = (
        jnp.where(col0, right, left),            # dx=0: source col w-1 (reflect at w=0 -> col 1)
        y,                                       # dx=1: source col w
        jnp.where(colW1, left, right),           # dx=2: source col w+1 (reflect at w=W-1 -> col W-2)
    )
    for dx in range(3):
        c = c_shift[dx]
        nxt = jnp.roll(c, -W, axis=1)            # [p] = c[p+W]  (row h+1)
        prv = jnp.roll(c, W, axis=1)             # [p] = c[p-W]  (row h-1)
        r_shift = (
            jnp.where(row0, nxt, prv),           # dy=0: source row h-1 (reflect at h=0 -> row 1)
            c,                                   # dy=1: source row h
            jnp.where(rowH1, prv, nxt),          # dy=2: source row h+1 (reflect at h=H-1 -> row H-2)
        )
        for dy in range(3):
            t = dy * 3 + dx
            col_ref[t * C:(t + 1) * C, :] = r_shift[dy]


# ----------------------------------------------------------------------------
# Fused kernel: FeaturesProcessing + 2x2 max pool, one batch element per step.
# ----------------------------------------------------------------------------
def _features_down_kernel(H, W, Cin, C1, Cout,
                          x_ref, w1_ref, b1_ref, w2_ref, b2_ref, wb_ref, bb_ref,
                          sel_ref, o_ref, col_ref):
    # x_ref:   (1, Cin, H*W)   bf16 flattened NCHW input
    # w1_ref:  (C1, 9*Cin)     bf16 conv1 weights (im2col-packed, tap-major)
    # w2_ref:  (Cout, 9*C1)    bf16 conv2 weights
    # wb_ref:  (Cout, Cin)     bf16 1x1 bottleneck weights
    # b*_ref:  (C, 1)          f32 biases
    # sel_ref: (H*W, H2*W2)    f32 0/1 pooling selector (picks the (2i,2j) anchor lanes)
    # o_ref:   (1, Cout, H2*W2) f32 pooled output (channels-major == NCHW)
    # col_ref: (9*C1, H*W)     bf16 VMEM scratch for the im2col operand
    HW = H * W
    x = x_ref[0]                                                  # (Cin, HW) bf16

    # ---- conv1 (3x3, reflect pad) as one matmul ----
    _im2col_reflect(col_ref, x, H, W)                             # rows [0, 9*Cin)
    acc1 = jnp.dot(w1_ref[...], col_ref[0:9 * Cin, :],
                   preferred_element_type=jnp.float32)            # (C1, HW) f32
    y1 = _mish_kernel(acc1 + b1_ref[...]).astype(jnp.bfloat16)

    # ---- conv2 (3x3, reflect pad) as one matmul ----
    _im2col_reflect(col_ref, y1, H, W)                            # rows [0, 9*C1)
    acc2 = jnp.dot(w2_ref[...], col_ref[0:9 * C1, :],
                   preferred_element_type=jnp.float32) + b2_ref[...]

    # ---- 1x1 bottleneck on the original input, residual add, final Mish ----
    hb = jnp.dot(wb_ref[...], x, preferred_element_type=jnp.float32) + bb_ref[...]
    yf = _mish_kernel(hb + acc2)                                  # (Cout, HW) f32

    # ---- fused MaxPool2d(2, 2, ceil_mode=True) ----
    right = jnp.roll(yf, -1, axis=1)                              # value at col w+1
    if W % 2 == 1:                                                # last (single-column) window
        lane = lax.broadcasted_iota(jnp.int32, (Cout, HW), 1)
        right = jnp.where((lane % W) == (W - 1), yf, right)
    m = jnp.maximum(yf, right)
    down = jnp.roll(m, -W, axis=1)                                # value at row h+1
    if H % 2 == 1:                                                # last (single-row) window
        lane = lax.broadcasted_iota(jnp.int32, (Cout, HW), 1)
        down = jnp.where(lane >= (H - 1) * W, m, down)
    m = jnp.maximum(m, down)                                      # pooled value at anchors (2i, 2j)

    # compact the anchor lanes into a dense (Cout, H2*W2) tile via a 0/1 selector matmul
    o_ref[0] = jnp.dot(m, sel_ref[...],
                       preferred_element_type=jnp.float32).astype(o_ref.dtype)


# ----------------------------------------------------------------------------
# Wrapper (NCHW in -> NCHW out, matching the PyTorch module)
# ----------------------------------------------------------------------------
def _pool_selector(H, W):
    H2, W2 = (H + 1) // 2, (W + 1) // 2
    j = jnp.arange(H2 * W2)
    anchors = 2 * (j // W2) * W + 2 * (j % W2)                    # flat index of each 2x2 window anchor
    rows = jnp.arange(H * W)
    return (rows[:, None] == anchors[None, :]).astype(jnp.float32)  # (H*W, H2*W2)


def features_downsample(x_nchw, kparams):
    w1p, b1, w2p, b2, wbp, bb = kparams
    N, Cin, H, W = x_nchw.shape
    assert H >= 2 and W >= 2, "reflect padding (pad=1) requires H, W >= 2"
    C1 = w1p.shape[0]
    Cout = w2p.shape[0]
    HW = H * W
    H2, W2 = (H + 1) // 2, (W + 1) // 2

    x_flat = x_nchw.reshape(N, Cin, HW).astype(jnp.bfloat16)      # free reshape + cheap cast
    sel = _pool_selector(H, W)

    kernel = functools.partial(_features_down_kernel, H, W, Cin, C1, Cout)
    out = pl.pallas_call(
        kernel,
        out_shape=jax.ShapeDtypeStruct((N, Cout, H2 * W2), jnp.float32),
        grid=(N,),
        in_specs=[
            pl.BlockSpec((1, Cin, HW), lambda n: (n, 0, 0)),
            pl.BlockSpec((C1, 9 * Cin), lambda n: (0, 0)),
            pl.BlockSpec((C1, 1), lambda n: (0, 0)),
            pl.BlockSpec((Cout, 9 * C1), lambda n: (0, 0)),
            pl.BlockSpec((Cout, 1), lambda n: (0, 0)),
            pl.BlockSpec((Cout, Cin), lambda n: (0, 0)),
            pl.BlockSpec((Cout, 1), lambda n: (0, 0)),
            pl.BlockSpec((HW, H2 * W2), lambda n: (0, 0)),
        ],
        out_specs=pl.BlockSpec((1, Cout, H2 * W2), lambda n: (n, 0, 0)),
        scratch_shapes=[pltpu.VMEM((9 * C1, HW), jnp.bfloat16)],
        compiler_params=pltpu.CompilerParams(dimension_semantics=("parallel",)),
    )(x_flat, w1p, b1, w2p, b2, wbp, bb, sel)

    return out.reshape(N, Cout, H2, W2)                           # contiguous -> free reshape


# ----------------------------------------------------------------------------
# Deterministic parameter init (PyTorch OIHW shapes) + conversion to kernel layout
# ----------------------------------------------------------------------------
def init_params_oihw(key, in_ch, out_ch):
    c1 = in_ch * 2
    ks = jax.random.split(key, 6)
    w1 = 0.25 * jax.random.normal(ks[0], (c1, in_ch, 3, 3), jnp.float32)
    b1 = 0.05 * jax.random.normal(ks[1], (c1,), jnp.float32)
    w2 = 0.25 * jax.random.normal(ks[2], (out_ch, c1, 3, 3), jnp.float32)
    b2 = 0.05 * jax.random.normal(ks[3], (out_ch,), jnp.float32)
    wb = 0.25 * jax.random.normal(ks[4], (out_ch, in_ch, 1, 1), jnp.float32)
    bb = 0.05 * jax.random.normal(ks[5], (out_ch,), jnp.float32)
    return (w1, b1, w2, b2, wb, bb)


def convert_params(torch_params):
    w1, b1, w2, b2, wb, bb = torch_params
    c1, cin = w1.shape[0], w1.shape[1]
    cout = w2.shape[0]
    # OIHW -> (O, 9*I) with column index = (dy*3 + dx)*I + i  (matches the im2col row order)
    w1p = jnp.transpose(w1, (0, 2, 3, 1)).reshape(c1, 9 * cin).astype(jnp.bfloat16)
    w2p = jnp.transpose(w2, (0, 2, 3, 1)).reshape(cout, 9 * c1).astype(jnp.bfloat16)
    wbp = wb[:, :, 0, 0].astype(jnp.bfloat16)                     # (O, I)
    return (w1p, b1.reshape(c1, 1).astype(jnp.float32),
            w2p, b2.reshape(cout, 1).astype(jnp.float32),
            wbp, bb.reshape(cout, 1).astype(jnp.float32))


# ----------------------------------------------------------------------------
# Pure-JAX (XLA) reference of the PyTorch module, NCHW semantics, f32
# ----------------------------------------------------------------------------
def _mish_ref(x):
    sp = jnp.log1p(jnp.exp(jnp.minimum(x, 20.0)))
    sp = jnp.where(x > 20.0, x, sp)
    return x * jnp.tanh(sp)


def reference_forward(x_nchw, torch_params):
    w1, b1, w2, b2, wb, bb = torch_params

    def conv3x3(x, w, b):
        xp = jnp.pad(x, ((0, 0), (0, 0), (1, 1), (1, 1)), mode="reflect")
        y = lax.conv_general_dilated(
            xp, w, (1, 1), "VALID",
            dimension_numbers=("NCHW", "OIHW", "NCHW"),
            precision=lax.Precision.HIGHEST)
        return y + b[None, :, None, None]

    def conv1x1(x, w, b):
        y = lax.conv_general_dilated(
            x, w, (1, 1), "VALID",
            dimension_numbers=("NCHW", "OIHW", "NCHW"),
            precision=lax.Precision.HIGHEST)
        return y + b[None, :, None, None]

    y = _mish_ref(conv3x3(x_nchw, w1, b1))
    y = conv3x3(y, w2, b2)
    hx = conv1x1(x_nchw, wb, bb)
    y = _mish_ref(hx + y)
    _, _, H, W = y.shape
    y = lax.reduce_window(y, -jnp.inf, lax.max,
                          window_dimensions=(1, 1, 2, 2),
                          window_strides=(1, 1, 2, 2),
                          padding=((0, 0), (0, 0), (0, H % 2), (0, W % 2)))
    return y


if __name__ == "__main__":
    N, Cin, Cout, H, W = 2, 4, 8, 16, 16
    key = jax.random.PRNGKey(0)
    kx, kp = jax.random.split(key)
    x = jax.random.normal(kx, (N, Cin, H, W), jnp.float32)        # NCHW, like PyTorch

    torch_params = init_params_oihw(kp, Cin, Cout)
    kparams = convert_params(torch_params)

    out = jax.block_until_ready(features_downsample(x, kparams))
    ref = jax.block_until_ready(reference_forward(x, torch_params))

    assert out.shape == (N, Cout, (H + 1) // 2, (W + 1) // 2), out.shape
    # combined abs/rel tolerance: kernel uses bf16 matmul operands (f32 accumulation)
    err = float(jnp.max(jnp.abs(out - ref) / (1.0 + jnp.abs(ref))))
    assert err < 5e-2, f"error too large: {err}"
    print("KERNEL_OK")
</pallas_src>

<mosaic_0001>
module attributes {stable_mosaic.version = 11 : i64} {
  func.func @_features_down_kernel(%arg0: i32, %arg1: memref<1x4x256xbf16, #tpu.memory_space<vmem>>, %arg2: memref<8x36xbf16, #tpu.memory_space<vmem>>, %arg3: memref<8x1xf32, #tpu.memory_space<vmem>>, %arg4: memref<8x72xbf16, #tpu.memory_space<vmem>>, %arg5: memref<8x1xf32, #tpu.memory_space<vmem>>, %arg6: memref<8x4xbf16, #tpu.memory_space<vmem>>, %arg7: memref<8x1xf32, #tpu.memory_space<vmem>>, %arg8: memref<256x64xf32, #tpu.memory_space<vmem>>, %arg9: memref<1x8x64xf32, #tpu.memory_space<vmem>>, %arg10: memref<72x256xbf16, #tpu.memory_space<vmem>>) attributes {dimension_semantics = [#tpu.dimension_semantics<parallel>], iteration_bounds = array<i64: 2>, scalar_prefetch = 0 : i64, scratch_operands = 1 : i64, tpu.core_type = #tpu.core_type<tc>, window_params = [{transform_indices = @transform_0, window_bounds = array<i64: 1, 4, 256>}, {pipeline_mode = #tpu.pipeline_mode<synchronous>, transform_indices = @transform_1, window_bounds = array<i64: 8, 36>}, {pipeline_mode = #tpu.pipeline_mode<synchronous>, transform_indices = @transform_2, window_bounds = array<i64: 8, 1>}, {pipeline_mode = #tpu.pipeline_mode<synchronous>, transform_indices = @transform_3, window_bounds = array<i64: 8, 72>}, {pipeline_mode = #tpu.pipeline_mode<synchronous>, transform_indices = @transform_4, window_bounds = array<i64: 8, 1>}, {pipeline_mode = #tpu.pipeline_mode<synchronous>, transform_indices = @transform_5, window_bounds = array<i64: 8, 4>}, {pipeline_mode = #tpu.pipeline_mode<synchronous>, transform_indices = @transform_6, window_bounds = array<i64: 8, 1>}, {pipeline_mode = #tpu.pipeline_mode<synchronous>, transform_indices = @transform_7, window_bounds = array<i64: 256, 64>}, {transform_indices = @transform_8, window_bounds = array<i64: 1, 8, 64>}]} {
    %c0 = arith.constant 0 : index
    %c0_0 = arith.constant 0 : index
    %c0_1 = arith.constant 0 : index
    %0 = vector.load %arg1[%c0, %c0_0, %c0_1] : memref<1x4x256xbf16, #tpu.memory_space<vmem>>, vector<1x4x256xbf16>
    %1 = vector.shape_cast %0 : vector<1x4x256xbf16> to vector<4x256xbf16>
    %2 = tpu.iota {dimensions = array<i32: 1>} : vector<4x256xi32>
    %c16_i32 = arith.constant 16 : i32
    %c0_i32 = arith.constant 0 : i32
    %3 = arith.cmpi eq, %c16_i32, %c0_i32 : i32
    %c1_i32 = arith.constant 1 : i32
    %4 = arith.select %3, %c1_i32, %c16_i32 : i32
    %5 = vector.broadcast %4 : i32 to vector<4x256xi32>
    %6 = arith.remsi %2, %5 : vector<4x256xi32>
    %c0_i32_2 = arith.constant 0 : i32
    %7 = vector.broadcast %c0_i32_2 : i32 to vector<4x256xi32>
    %8 = arith.cmpi ne, %6, %7 : vector<4x256xi32>
    %c0_i32_3 = arith.constant 0 : i32
    %9 = vector.broadcast %c0_i32_3 : i32 to vector<4x256xi32>
    %10 = arith.cmpi slt, %6, %9 : vector<4x256xi32>
    %c0_i32_4 = arith.constant 0 : i32
    %11 = arith.cmpi slt, %4, %c0_i32_4 : i32
    %12 = vector.broadcast %11 : i1 to vector<4x256xi1>
    %13 = vector.broadcast %12 : vector<4x256xi1> to vector<4x256xi1>
    %14 = arith.xori %10, %13 : vector<4x256xi1>
    %15 = arith.andi %14, %8 : vector<4x256xi1>
    %16 = vector.broadcast %4 : i32 to vector<4x256xi32>
    %17 = arith.addi %6, %16 : vector<4x256xi32>
    %18 = arith.select %15, %17, %6 : vector<4x256xi1>, vector<4x256xi32>
    %c0_i32_5 = arith.constant 0 : i32
    %19 = vector.broadcast %c0_i32_5 : i32 to vector<4x256xi32>
    %20 = arith.cmpi eq, %18, %19 : vector<4x256xi32>
    %c16_i32_6 = arith.constant 16 : i32
    %c0_i32_7 = arith.constant 0 : i32
    %21 = arith.cmpi eq, %c16_i32_6, %c0_i32_7 : i32
    %c1_i32_8 = arith.constant 1 : i32
    %22 = arith.select %21, %c1_i32_8, %c16_i32_6 : i32
    %23 = vector.broadcast %22 : i32 to vector<4x256xi32>
    %24 = arith.remsi %2, %23 : vector<4x256xi32>
    %c0_i32_9 = arith.constant 0 : i32
    %25 = vector.broadcast %c0_i32_9 : i32 to vector<4x256xi32>
    %26 = arith.cmpi ne, %24, %25 : vector<4x256xi32>
    %c0_i32_10 = arith.constant 0 : i32
    %27 = vector.broadcast %c0_i32_10 : i32 to vector<4x256xi32>
    %28 = arith.cmpi slt, %24, %27 : vector<4x256xi32>
    %c0_i32_11 = arith.constant 0 : i32
    %29 = arith.cmpi slt, %22, %c0_i32_11 : i32
    %30 = vector.broadcast %29 : i1 to vector<4x256xi1>
    %31 = vector.broadcast %30 : vector<4x256xi1> to vector<4x256xi1>
    %32 = arith.xori %28, %31 : vector<4x256xi1>
    %33 = arith.andi %32, %26 : vector<4x256xi1>
    %34 = vector.broadcast %22 : i32 to vector<4x256xi32>
    %35 = arith.addi %24, %34 : vector<4x256xi32>
    %36 = arith.select %33, %35, %24 : vector<4x256xi1>, vector<4x256xi32>
    %c15_i32 = arith.constant 15 : i32
    %37 = vector.broadcast %c15_i32 : i32 to vector<4x256xi32>
    %38 = arith.cmpi eq, %36, %37 : vector<4x256xi32>
    %c16_i32_12 = arith.constant 16 : i32
    %39 = vector.broadcast %c16_i32_12 : i32 to vector<4x256xi32>
    %40 = arith.cmpi slt, %2, %39 : vector<4x256xi32>
    %c240_i32 = arith.constant 240 : i32
    %41 = vector.broadcast %c240_i32 : i32 to vector<4x256xi32>
    %42 = arith.cmpi sge, %2, %41 : vector<4x256xi32>
    %43 = vector.extract_strided_slice %1 {offsets = [0, 255], sizes = [4, 1], strides = [1, 1]} : vector<4x256xbf16> to vector<4x1xbf16>
    %44 = vector.extract_strided_slice %1 {offsets = [0, 0], sizes = [4, 255], strides = [1, 1]} : vector<4x256xbf16> to vector<4x255xbf16>
    %45 = tpu.concatenate %43, %44 in 1 : vector<4x1xbf16>, vector<4x255xbf16> -> vector<4x256xbf16>
    %46 = vector.extract_strided_slice %1 {offsets = [0, 1], sizes = [4, 255], strides = [1, 1]} : vector<4x256xbf16> to vector<4x255xbf16>
    %47 = vector.extract_strided_slice %1 {offsets = [0, 0], sizes = [4, 1], strides = [1, 1]} : vector<4x256xbf16> to vector<4x1xbf16>
    %48 = tpu.concatenate %46, %47 in 1 : vector<4x255xbf16>, vector<4x1xbf16> -> vector<4x256xbf16>
    %49 = arith.select %20, %48, %45 : vector<4x256xi1>, vector<4x256xbf16>
    %50 = arith.select %38, %45, %48 : vector<4x256xi1>, vector<4x256xbf16>
    %51 = vector.extract_strided_slice %49 {offsets = [0, 16], sizes = [4, 240], strides = [1, 1]} : vector<4x256xbf16> to vector<4x240xbf16>
    %52 = vector.extract_strided_slice %49 {offsets = [0, 0], sizes = [4, 16], strides = [1, 1]} : vector<4x256xbf16> to vector<4x16xbf16>
    %53 = tpu.concatenate %51, %52 in 1 : vector<4x240xbf16>, vector<4x16xbf16> -> vector<4x256xbf16>
    %54 = vector.extract_strided_slice %49 {offsets = [0, 240], sizes = [4, 16], strides = [1, 1]} : vector<4x256xbf16> to vector<4x16xbf16>
    %55 = vector.extract_strided_slice %49 {offsets = [0, 0], sizes = [4, 240], strides = [1, 1]} : vector<4x256xbf16> to vector<4x240xbf16>
    %56 = tpu.concatenate %54, %55 in 1 : vector<4x16xbf16>, vector<4x240xbf16> -> vector<4x256xbf16>
    %57 = arith.select %40, %53, %56 : vector<4x256xi1>, vector<4x256xbf16>
    %58 = arith.select %42, %56, %53 : vector<4x256xi1>, vector<4x256xbf16>
    %c0_13 = arith.constant 0 : index
    %c0_14 = arith.constant 0 : index
    %59 = vector.load %arg10[%c0_13, %c0_14] : memref<72x256xbf16, #tpu.memory_space<vmem>>, vector<4x256xbf16>
    tpu.vector_store %arg10[%c0_13, %c0_14], %57 {strides = array<i32>} : memref<72x256xbf16, #tpu.memory_space<vmem>>, vector<4x256xbf16>,
    %c12 = arith.constant 12 : index
    %c0_15 = arith.constant 0 : index
    %60 = vector.load %arg10[%c12, %c0_15] : memref<72x256xbf16, #tpu.memory_space<vmem>>, vector<4x256xbf16>
    tpu.vector_store %arg10[%c12, %c0_15], %49 {strides = array<i32>} : memref<72x256xbf16, #tpu.memory_space<vmem>>, vector<4x256xbf16>,
    %c24 = arith.constant 24 : index
    %c0_16 = arith.constant 0 : index
    %61 = vector.load %arg10[%c24, %c0_16] : memref<72x256xbf16, #tpu.memory_space<vmem>>, vector<4x256xbf16>
    tpu.vector_store %arg10[%c24, %c0_16], %58 {strides = array<i32>} : memref<72x256xbf16, #tpu.memory_space<vmem>>, vector<4x256xbf16>,
    %62 = vector.extract_strided_slice %1 {offsets = [0, 16], sizes = [4, 240], strides = [1, 1]} : vector<4x256xbf16> to vector<4x240xbf16>
    %63 = vector.extract_strided_slice %1 {offsets = [0, 0], sizes = [4, 16], strides = [1, 1]} : vector<4x256xbf16> to vector<4x16xbf16>
    %64 = tpu.concatenate %62, %63 in 1 : vector<4x240xbf16>, vector<4x16xbf16> -> vector<4x256xbf16>
    %65 = vector.extract_strided_slice %1 {offsets = [0, 240], sizes = [4, 16], strides = [1, 1]} : vector<4x256xbf16> to vector<4x16xbf16>
    %66 = vector.extract_strided_slice %1 {offsets = [0, 0], sizes = [4, 240], strides = [1, 1]} : vector<4x256xbf16> to vector<4x240xbf16>
    %67 = tpu.concatenate %65, %66 in 1 : vector<4x16xbf16>, vector<4x240xbf16> -> vector<4x256xbf16>
    %68 = arith.select %40, %64, %67 : vector<4x256xi1>, vector<4x256xbf16>
    %69 = arith.select %42, %67, %64 : vector<4x256xi1>, vector<4x256xbf16>
    %c4 = arith.constant 4 : index
    %c0_17 = arith.constant 0 : index
    %70 = vector.load %arg10[%c4, %c0_17] : memref<72x256xbf16, #tpu.memory_space<vmem>>, vector<4x256xbf16>
    tpu.vector_store %arg10[%c4, %c0_17], %68 {strides = array<i32>} : memref<72x256xbf16, #tpu.memory_space<vmem>>, vector<4x256xbf16>,
    %c16 = arith.constant 16 : index
    %c0_18 = arith.constant 0 : index
    %71 = vector.load %arg10[%c16, %c0_18] : memref<72x256xbf16, #tpu.memory_space<vmem>>, vector<4x256xbf16>
    tpu.vector_store %arg10[%c16, %c0_18], %1 {strides = array<i32>} : memref<72x256xbf16, #tpu.memory_space<vmem>>, vector<4x256xbf16>,
    %c28 = arith.constant 28 : index
    %c0_19 = arith.constant 0 : index
    %72 = vector.load %arg10[%c28, %c0_19] : memref<72x256xbf16, #tpu.memory_space<vmem>>, vector<4x256xbf16>
    tpu.vector_store %arg10[%c28, %c0_19], %69 {strides = array<i32>} : memref<72x256xbf16, #tpu.memory_space<vmem>>, vector<4x256xbf16>,
    %73 = vector.extract_strided_slice %50 {offsets = [0, 16], sizes = [4, 240], strides = [1, 1]} : vector<4x256xbf16> to vector<4x240xbf16>
    %74 = vector.extract_strided_slice %50 {offsets = [0, 0], sizes = [4, 16], strides = [1, 1]} : vector<4x256xbf16> to vector<4x16xbf16>
    %75 = tpu.concatenate %73, %74 in 1 : vector<4x240xbf16>, vector<4x16xbf16> -> vector<4x256xbf16>
    %76 = vector.extract_strided_slice %50 {offsets = [0, 240], sizes = [4, 16], strides = [1, 1]} : vector<4x256xbf16> to vector<4x16xbf16>
    %77 = vector.extract_strided_slice %50 {offsets = [0, 0], sizes = [4, 240], strides = [1, 1]} : vector<4x256xbf16> to vector<4x240xbf16>
    %78 = tpu.concatenate %76, %77 in 1 : vector<4x16xbf16>, vector<4x240xbf16> -> vector<4x256xbf16>
    %79 = arith.select %40, %75, %78 : vector<4x256xi1>, vector<4x256xbf16>
    %80 = arith.select %42, %78, %75 : vector<4x256xi1>, vector<4x256xbf16>
    %c8 = arith.constant 8 : index
    %c0_20 = arith.constant 0 : index
    %81 = vector.load %arg10[%c8, %c0_20] : memref<72x256xbf16, #tpu.memory_space<vmem>>, vector<4x256xbf16>
    tpu.vector_store %arg10[%c8, %c0_20], %79 {strides = array<i32>} : memref<72x256xbf16, #tpu.memory_space<vmem>>, vector<4x256xbf16>,
    %c20 = arith.constant 20 : index
    %c0_21 = arith.constant 0 : index
    %82 = vector.load %arg10[%c20, %c0_21] : memref<72x256xbf16, #tpu.memory_space<vmem>>, vector<4x256xbf16>
    tpu.vector_store %arg10[%c20, %c0_21], %50 {strides = array<i32>} : memref<72x256xbf16, #tpu.memory_space<vmem>>, vector<4x256xbf16>,
    %c32 = arith.constant 32 : index
    %c0_22 = arith.constant 0 : index
    %83 = vector.load %arg10[%c32, %c0_22] : memref<72x256xbf16, #tpu.memory_space<vmem>>, vector<4x256xbf16>
    tpu.vector_store %arg10[%c32, %c0_22], %80 {strides = array<i32>} : memref<72x256xbf16, #tpu.memory_space<vmem>>, vector<4x256xbf16>,
    %c0_23 = arith.constant 0 : index
    %c0_24 = arith.constant 0 : index
    %84 = vector.load %arg2[%c0_23, %c0_24] : memref<8x36xbf16, #tpu.memory_space<vmem>>, vector<8x36xbf16>
    %c0_25 = arith.constant 0 : index
    %c0_26 = arith.constant 0 : index
    %85 = vector.load %arg10[%c0_25, %c0_26] : memref<72x256xbf16, #tpu.memory_space<vmem>>, vector<36x256xbf16>
    %cst = arith.constant dense<0.000000e+00> : vector<8x256xf32>
    %86 = tpu.matmul %84, %85, %cst {dimension_numbers = #tpu.dot_dimension_numbers<[1], [0], [0], [1], [0, 0, 1, 1], [], []>} : vector<8x36xbf16>, vector<36x256xbf16>, vector<8x256xf32> -> vector<8x256xf32>
    %c0_27 = arith.constant 0 : index
    %c0_28 = arith.constant 0 : index
    %87 = vector.load %arg3[%c0_27, %c0_28] : memref<8x1xf32, #tpu.memory_space<vmem>>, vector<8x1xf32>
    %88 = vector.broadcast %87 : vector<8x1xf32> to vector<8x256xf32>
    %89 = arith.addf %86, %88 : vector<8x256xf32>
    %cst_29 = arith.constant 2.000000e+01 : f32
    %90 = vector.broadcast %cst_29 : f32 to vector<8x256xf32>
    %91 = arith.minimumf %89, %90 : vector<8x256xf32>
    %92 = math.exp %91 : vector<8x256xf32>
    %cst_30 = arith.constant 2.000000e+00 : f32
    %93 = vector.broadcast %cst_30 : f32 to vector<8x256xf32>
    %94 = arith.addf %92, %93 : vector<8x256xf32>
    %95 = arith.mulf %92, %94 : vector<8x256xf32>
    %cst_31 = arith.constant 2.000000e+00 : f32
    %96 = vector.broadcast %cst_31 : f32 to vector<8x256xf32>
    %97 = arith.addf %95, %96 : vector<8x256xf32>
    %98 = tpu.reciprocal %97 {approx = true} : vector<8x256xf32> -> vector<8x256xf32>
    %99 = arith.mulf %95, %98 : vector<8x256xf32>
    %100 = arith.mulf %89, %99 : vector<8x256xf32>
    %101 = arith.truncf %100 : vector<8x256xf32> to vector<8x256xbf16>
    %102 = tpu.iota {dimensions = array<i32: 1>} : vector<8x256xi32>
    %c16_i32_32 = arith.constant 16 : i32
    %c0_i32_33 = arith.constant 0 : i32
    %103 = arith.cmpi eq, %c16_i32_32, %c0_i32_33 : i32
    %c1_i32_34 = arith.constant 1 : i32
    %104 = arith.select %103, %c1_i32_34, %c16_i32_32 : i32
    %105 = vector.broadcast %104 : i32 to vector<8x256xi32>
    %106 = arith.remsi %102, %105 : vector<8x256xi32>
    %c0_i32_35 = arith.constant 0 : i32
    %107 = vector.broadcast %c0_i32_35 : i32 to vector<8x256xi32>
    %108 = arith.cmpi ne, %106, %107 : vector<8x256xi32>
    %c0_i32_36 = arith.constant 0 : i32
    %109 = vector.broadcast %c0_i32_36 : i32 to vector<8x256xi32>
    %110 = arith.cmpi slt, %106, %109 : vector<8x256xi32>
    %c0_i32_37 = arith.constant 0 : i32
    %111 = arith.cmpi slt, %104, %c0_i32_37 : i32
    %112 = vector.broadcast %111 : i1 to vector<8x256xi1>
    %113 = vector.broadcast %112 : vector<8x256xi1> to vector<8x256xi1>
    %114 = arith.xori %110, %113 : vector<8x256xi1>
    %115 = arith.andi %114, %108 : vector<8x256xi1>
    %116 = vector.broadcast %104 : i32 to vector<8x256xi32>
    %117 = arith.addi %106, %116 : vector<8x256xi32>
    %118 = arith.select %115, %117, %106 : vector<8x256xi1>, vector<8x256xi32>
    %c0_i32_38 = arith.constant 0 : i32
    %119 = vector.broadcast %c0_i32_38 : i32 to vector<8x256xi32>
    %120 = arith.cmpi eq, %118, %119 : vector<8x256xi32>
    %c16_i32_39 = arith.constant 16 : i32
    %c0_i32_40 = arith.constant 0 : i32
    %121 = arith.cmpi eq, %c16_i32_39, %c0_i32_40 : i32
    %c1_i32_41 = arith.constant 1 : i32
    %122 = arith.select %121, %c1_i32_41, %c16_i32_39 : i32
    %123 = vector.broadcast %122 : i32 to vector<8x256xi32>
    %124 = arith.remsi %102, %123 : vector<8x256xi32>
    %c0_i32_42 = arith.constant 0 : i32
    %125 = vector.broadcast %c0_i32_42 : i32 to vector<8x256xi32>
    %126 = arith.cmpi ne, %124, %125 : vector<8x256xi32>
    %c0_i32_43 = arith.constant 0 : i32
    %127 = vector.broadcast %c0_i32_43 : i32 to vector<8x256xi32>
    %128 = arith.cmpi slt, %124, %127 : vector<8x256xi32>
    %c0_i32_44 = arith.constant 0 : i32
    %129 = arith.cmpi slt, %122, %c0_i32_44 : i32
    %130 = vector.broadcast %129 : i1 to vector<8x256xi1>
    %131 = vector.broadcast %130 : vector<8x256xi1> to vector<8x256xi1>
    %132 = arith.xori %128, %131 : vector<8x256xi1>
    %133 = arith.andi %132, %126 : vector<8x256xi1>
    %134 = vector.broadcast %122 : i32 to vector<8x256xi32>
    %135 = arith.addi %124, %134 : vector<8x256xi32>
    %136 = arith.select %133, %135, %124 : vector<8x256xi1>, vector<8x256xi32>
    %c15_i32_45 = arith.constant 15 : i32
    %137 = vector.broadcast %c15_i32_45 : i32 to vector<8x256xi32>
    %138 = arith.cmpi eq, %136, %137 : vector<8x256xi32>
    %c16_i32_46 = arith.constant 16 : i32
    %139 = vector.broadcast %c16_i32_46 : i32 to vector<8x256xi32>
    %140 = arith.cmpi slt, %102, %139 : vector<8x256xi32>
    %c240_i32_47 = arith.constant 240 : i32
    %141 = vector.broadcast %c240_i32_47 : i32 to vector<8x256xi32>
    %142 = arith.cmpi sge, %102, %141 : vector<8x256xi32>
    %143 = vector.extract_strided_slice %101 {offsets = [0, 255], sizes = [8, 1], strides = [1, 1]} : vector<8x256xbf16> to vector<8x1xbf16>
    %144 = vector.extract_strided_slice %101 {offsets = [0, 0], sizes = [8, 255], strides = [1, 1]} : vector<8x256xbf16> to vector<8x255xbf16>
    %145 = tpu.concatenate %143, %144 in 1 : vector<8x1xbf16>, vector<8x255xbf16> -> vector<8x256xbf16>
    %146 = vector.extract_strided_slice %101 {offsets = [0, 1], sizes = [8, 255], strides = [1, 1]} : vector<8x256xbf16> to vector<8x255xbf16>
    %147 = vector.extract_strided_slice %101 {offsets = [0, 0], sizes = [8, 1], strides = [1, 1]} : vector<8x256xbf16> to vector<8x1xbf16>
    %148 = tpu.concatenate %146, %147 in 1 : vector<8x255xbf16>, vector<8x1xbf16> -> vector<8x256xbf16>
    %149 = arith.select %120, %148, %145 : vector<8x256xi1>, vector<8x256xbf16>
    %150 = arith.select %138, %145, %148 : vector<8x256xi1>, vector<8x256xbf16>
    %151 = vector.extract_strided_slice %149 {offsets = [0, 16], sizes = [8, 240], strides = [1, 1]} : vector<8x256xbf16> to vector<8x240xbf16>
    %152 = vector.extract_strided_slice %149 {offsets = [0, 0], sizes = [8, 16], strides = [1, 1]} : vector<8x256xbf16> to vector<8x16xbf16>
    %153 = tpu.concatenate %151, %152 in 1 : vector<8x240xbf16>, vector<8x16xbf16> -> vector<8x256xbf16>
    %154 = vector.extract_strided_slice %149 {offsets = [0, 240], sizes = [8, 16], strides = [1, 1]} : vector<8x256xbf16> to vector<8x16xbf16>
    %155 = vector.extract_strided_slice %149 {offsets = [0, 0], sizes = [8, 240], strides = [1, 1]} : vector<8x256xbf16> to vector<8x240xbf16>
    %156 = tpu.concatenate %154, %155 in 1 : vector<8x16xbf16>, vector<8x240xbf16> -> vector<8x256xbf16>
    %157 = arith.select %140, %153, %156 : vector<8x256xi1>, vector<8x256xbf16>
    %158 = arith.select %142, %156, %153 : vector<8x256xi1>, vector<8x256xbf16>
    %c0_48 = arith.constant 0 : index
    %c0_49 = arith.constant 0 : index
    %159 = vector.load %arg10[%c0_48, %c0_49] : memref<72x256xbf16, #tpu.memory_space<vmem>>, vector<8x256xbf16>
    tpu.vector_store %arg10[%c0_48, %c0_49], %157 {strides = array<i32>} : memref<72x256xbf16, #tpu.memory_space<vmem>>, vector<8x256xbf16>,
    %c24_50 = arith.constant 24 : index
    %c0_51 = arith.constant 0 : index
    %160 = vector.load %arg10[%c24_50, %c0_51] : memref<72x256xbf16, #tpu.memory_space<vmem>>, vector<8x256xbf16>
    tpu.vector_store %arg10[%c24_50, %c0_51], %149 {strides = array<i32>} : memref<72x256xbf16, #tpu.memory_space<vmem>>, vector<8x256xbf16>,
    %c48 = arith.constant 48 : index
    %c0_52 = arith.constant 0 : index
    %161 = vector.load %arg10[%c48, %c0_52] : memref<72x256xbf16, #tpu.memory_space<vmem>>, vector<8x256xbf16>
    tpu.vector_store %arg10[%c48, %c0_52], %158 {strides = array<i32>} : memref<72x256xbf16, #tpu.memory_space<vmem>>, vector<8x256xbf16>,
    %162 = vector.extract_strided_slice %101 {offsets = [0, 16], sizes = [8, 240], strides = [1, 1]} : vector<8x256xbf16> to vector<8x240xbf16>
    %163 = vector.extract_strided_slice %101 {offsets = [0, 0], sizes = [8, 16], strides = [1, 1]} : vector<8x256xbf16> to vector<8x16xbf16>
    %164 = tpu.concatenate %162, %163 in 1 : vector<8x240xbf16>, vector<8x16xbf16> -> vector<8x256xbf16>
    %165 = vector.extract_strided_slice %101 {offsets = [0, 240], sizes = [8, 16], strides = [1, 1]} : vector<8x256xbf16> to vector<8x16xbf16>
    %166 = vector.extract_strided_slice %101 {offsets = [0, 0], sizes = [8, 240], strides = [1, 1]} : vector<8x256xbf16> to vector<8x240xbf16>
    %167 = tpu.concatenate %165, %166 in 1 : vector<8x16xbf16>, vector<8x240xbf16> -> vector<8x256xbf16>
    %168 = arith.select %140, %164, %167 : vector<8x256xi1>, vector<8x256xbf16>
    %169 = arith.select %142, %167, %164 : vector<8x256xi1>, vector<8x256xbf16>
    %c8_53 = arith.constant 8 : index
    %c0_54 = arith.constant 0 : index
    %170 = vector.load %arg10[%c8_53, %c0_54] : memref<72x256xbf16, #tpu.memory_space<vmem>>, vector<8x256xbf16>
    tpu.vector_store %arg10[%c8_53, %c0_54], %168 {strides = array<i32>} : memref<72x256xbf16, #tpu.memory_space<vmem>>, vector<8x256xbf16>,
    %c32_55 = arith.constant 32 : index
    %c0_56 = arith.constant 0 : index
    %171 = vector.load %arg10[%c32_55, %c0_56] : memref<72x256xbf16, #tpu.memory_space<vmem>>, vector<8x256xbf16>
    tpu.vector_store %arg10[%c32_55, %c0_56], %101 {strides = array<i32>} : memref<72x256xbf16, #tpu.memory_space<vmem>>, vector<8x256xbf16>,
    %c56 = arith.constant 56 : index
    %c0_57 = arith.constant 0 : index
    %172 = vector.load %arg10[%c56, %c0_57] : memref<72x256xbf16, #tpu.memory_space<vmem>>, vector<8x256xbf16>
    tpu.vector_store %arg10[%c56, %c0_57], %169 {strides = array<i32>} : memref<72x256xbf16, #tpu.memory_space<vmem>>, vector<8x256xbf16>,
    %173 = vector.extract_strided_slice %150 {offsets = [0, 16], sizes = [8, 240], strides = [1, 1]} : vector<8x256xbf16> to vector<8x240xbf16>
    %174 = vector.extract_strided_slice %150 {offsets = [0, 0], sizes = [8, 16], strides = [1, 1]} : vector<8x256xbf16> to vector<8x16xbf16>
    %175 = tpu.concatenate %173, %174 in 1 : vector<8x240xbf16>, vector<8x16xbf16> -> vector<8x256xbf16>
    %176 = vector.extract_strided_slice %150 {offsets = [0, 240], sizes = [8, 16], strides = [1, 1]} : vector<8x256xbf16> to vector<8x16xbf16>
    %177 = vector.extract_strided_slice %150 {offsets = [0, 0], sizes = [8, 240], strides = [1, 1]} : vector<8x256xbf16> to vector<8x240xbf16>
    %178 = tpu.concatenate %176, %177 in 1 : vector<8x16xbf16>, vector<8x240xbf16> -> vector<8x256xbf16>
    %179 = arith.select %140, %175, %178 : vector<8x256xi1>, vector<8x256xbf16>
    %180 = arith.select %142, %178, %175 : vector<8x256xi1>, vector<8x256xbf16>
    %c16_58 = arith.constant 16 : index
    %c0_59 = arith.constant 0 : index
    %181 = vector.load %arg10[%c16_58, %c0_59] : memref<72x256xbf16, #tpu.memory_space<vmem>>, vector<8x256xbf16>
    tpu.vector_store %arg10[%c16_58, %c0_59], %179 {strides = array<i32>} : memref<72x256xbf16, #tpu.memory_space<vmem>>, vector<8x256xbf16>,
    %c40 = arith.constant 40 : index
    %c0_60 = arith.constant 0 : index
    %182 = vector.load %arg10[%c40, %c0_60] : memref<72x256xbf16, #tpu.memory_space<vmem>>, vector<8x256xbf16>
    tpu.vector_store %arg10[%c40, %c0_60], %150 {strides = array<i32>} : memref<72x256xbf16, #tpu.memory_space<vmem>>, vector<8x256xbf16>,
    %c64 = arith.constant 64 : index
    %c0_61 = arith.constant 0 : index
    %183 = vector.load %arg10[%c64, %c0_61] : memref<72x256xbf16, #tpu.memory_space<vmem>>, vector<8x256xbf16>
    tpu.vector_store %arg10[%c64, %c0_61], %180 {strides = array<i32>} : memref<72x256xbf16, #tpu.memory_space<vmem>>, vector<8x256xbf16>,
    %c0_62 = arith.constant 0 : index
    %c0_63 = arith.constant 0 : index
    %184 = vector.load %arg4[%c0_62, %c0_63] : memref<8x72xbf16, #tpu.memory_space<vmem>>, vector<8x72xbf16>
    %c0_64 = arith.constant 0 : index
    %c0_65 = arith.constant 0 : index
    %185 = vector.load %arg10[%c0_64, %c0_65] : memref<72x256xbf16, #tpu.memory_space<vmem>>, vector<72x256xbf16>
    %cst_66 = arith.constant dense<0.000000e+00> : vector<8x256xf32>
    %186 = tpu.matmul %184, %185, %cst_66 {dimension_numbers = #tpu.dot_dimension_numbers<[1], [0], [0], [1], [0, 0, 1, 1], [], []>} : vector<8x72xbf16>, vector<72x256xbf16>, vector<8x256xf32> -> vector<8x256xf32>
    %c0_67 = arith.constant 0 : index
    %c0_68 = arith.constant 0 : index
    %187 = vector.load %arg5[%c0_67, %c0_68] : memref<8x1xf32, #tpu.memory_space<vmem>>, vector<8x1xf32>
    %188 = vector.broadcast %187 : vector<8x1xf32> to vector<8x256xf32>
    %189 = arith.addf %186, %188 : vector<8x256xf32>
    %c0_69 = arith.constant 0 : index
    %c0_70 = arith.constant 0 : index
    %190 = vector.load %arg6[%c0_69, %c0_70] : memref<8x4xbf16, #tpu.memory_space<vmem>>, vector<8x4xbf16>
    %cst_71 = arith.constant dense<0.000000e+00> : vector<8x256xf32>
    %191 = tpu.matmul %190, %1, %cst_71 {dimension_numbers = #tpu.dot_dimension_numbers<[1], [0], [0], [1], [0, 0, 1, 1], [], []>} : vector<8x4xbf16>, vector<4x256xbf16>, vector<8x256xf32> -> vector<8x256xf32>
    %c0_72 = arith.constant 0 : index
    %c0_73 = arith.constant 0 : index
    %192 = vector.load %arg7[%c0_72, %c0_73] : memref<8x1xf32, #tpu.memory_space<vmem>>, vector<8x1xf32>
    %193 = vector.broadcast %192 : vector<8x1xf32> to vector<8x256xf32>
    %194 = arith.addf %191, %193 : vector<8x256xf32>
    %195 = arith.addf %194, %189 : vector<8x256xf32>
    %cst_74 = arith.constant 2.000000e+01 : f32
    %196 = vector.broadcast %cst_74 : f32 to vector<8x256xf32>
    %197 = arith.minimumf %195, %196 : vector<8x256xf32>
    %198 = math.exp %197 : vector<8x256xf32>
    %cst_75 = arith.constant 2.000000e+00 : f32
    %199 = vector.broadcast %cst_75 : f32 to vector<8x256xf32>
    %200 = arith.addf %198, %199 : vector<8x256xf32>
    %201 = arith.mulf %198, %200 : vector<8x256xf32>
    %cst_76 = arith.constant 2.000000e+00 : f32
    %202 = vector.broadcast %cst_76 : f32 to vector<8x256xf32>
    %203 = arith.addf %201, %202 : vector<8x256xf32>
    %204 = tpu.reciprocal %203 {approx = true} : vector<8x256xf32> -> vector<8x256xf32>
    %205 = arith.mulf %201, %204 : vector<8x256xf32>
    %206 = arith.mulf %195, %205 : vector<8x256xf32>
    %207 = vector.extract_strided_slice %206 {offsets = [0, 1], sizes = [8, 255], strides = [1, 1]} : vector<8x256xf32> to vector<8x255xf32>
    %208 = vector.extract_strided_slice %206 {offsets = [0, 0], sizes = [8, 1], strides = [1, 1]} : vector<8x256xf32> to vector<8x1xf32>
    %209 = tpu.concatenate %207, %208 in 1 : vector<8x255xf32>, vector<8x1xf32> -> vector<8x256xf32>
    %210 = arith.maximumf %206, %209 : vector<8x256xf32>
    %211 = vector.extract_strided_slice %210 {offsets = [0, 16], sizes = [8, 240], strides = [1, 1]} : vector<8x256xf32> to vector<8x240xf32>
    %212 = vector.extract_strided_slice %210 {offsets = [0, 0], sizes = [8, 16], strides = [1, 1]} : vector<8x256xf32> to vector<8x16xf32>
    %213 = tpu.concatenate %211, %212 in 1 : vector<8x240xf32>, vector<8x16xf32> -> vector<8x256xf32>
    %214 = arith.maximumf %210, %213 : vector<8x256xf32>
    %c0_77 = arith.constant 0 : index
    %c0_78 = arith.constant 0 : index
    %215 = vector.load %arg8[%c0_77, %c0_78] : memref<256x64xf32, #tpu.memory_space<vmem>>, vector<256x64xf32>
    %cst_79 = arith.constant dense<0.000000e+00> : vector<8x64xf32>
    %216 = tpu.matmul %214, %215, %cst_79 {dimension_numbers = #tpu.dot_dimension_numbers<[1], [0], [0], [1], [0, 0, 1, 1], [], []>} : vector<8x256xf32>, vector<256x64xf32>, vector<8x64xf32> -> vector<8x64xf32>
    %c0_80 = arith.constant 0 : index
    %c0_81 = arith.constant 0 : index
    %c0_82 = arith.constant 0 : index
    %217 = vector.load %arg9[%c0_80, %c0_81, %c0_82] : memref<1x8x64xf32, #tpu.memory_space<vmem>>, vector<1x8x64xf32>
    %218 = vector.shape_cast %217 : vector<1x8x64xf32> to vector<8x64xf32>
    %219 = vector.shape_cast %216 : vector<8x64xf32> to vector<1x8x64xf32>
    tpu.vector_store %arg9[%c0_80, %c0_81, %c0_82], %219 {strides = array<i32>} : memref<1x8x64xf32, #tpu.memory_space<vmem>>, vector<1x8x64xf32>,
    return
  }
  func.func @transform_0(%arg0: i32) -> (i32, i32, i32) {
    %c0_i32 = arith.constant 0 : i32
    %c0_i32_0 = arith.constant 0 : i32
    %c0_i32_1 = arith.constant 0 : i32
    return %arg0, %c0_i32, %c0_i32_0 : i32, i32, i32
  }
  func.func @transform_1(%arg0: i32) -> (i32, i32) {
    %c0_i32 = arith.constant 0 : i32
    %c0_i32_0 = arith.constant 0 : i32
    %c0_i32_1 = arith.constant 0 : i32
    return %c0_i32, %c0_i32_0 : i32, i32
  }
  func.func @transform_2(%arg0: i32) -> (i32, i32) {
    %c0_i32 = arith.constant 0 : i32
    %c0_i32_0 = arith.constant 0 : i32
    %c0_i32_1 = arith.constant 0 : i32
    return %c0_i32, %c0_i32_0 : i32, i32
  }
  func.func @transform_3(%arg0: i32) -> (i32, i32) {
    %c0_i32 = arith.constant 0 : i32
    %c0_i32_0 = arith.constant 0 : i32
    %c0_i32_1 = arith.constant 0 : i32
    return %c0_i32, %c0_i32_0 : i32, i32
  }
  func.func @transform_4(%arg0: i32) -> (i32, i32) {
    %c0_i32 = arith.constant 0 : i32
    %c0_i32_0 = arith.constant 0 : i32
    %c0_i32_1 = arith.constant 0 : i32
    return %c0_i32, %c0_i32_0 : i32, i32
  }
  func.func @transform_5(%arg0: i32) -> (i32, i32) {
    %c0_i32 = arith.constant 0 : i32
    %c0_i32_0 = arith.constant 0 : i32
    %c0_i32_1 = arith.constant 0 : i32
    return %c0_i32, %c0_i32_0 : i32, i32
  }
  func.func @transform_6(%arg0: i32) -> (i32, i32) {
    %c0_i32 = arith.constant 0 : i32
    %c0_i32_0 = arith.constant 0 : i32
    %c0_i32_1 = arith.constant 0 : i32
    return %c0_i32, %c0_i32_0 : i32, i32
  }
  func.func @transform_7(%arg0: i32) -> (i32, i32) {
    %c0_i32 = arith.constant 0 : i32
    %c0_i32_0 = arith.constant 0 : i32
    %c0_i32_1 = arith.constant 0 : i32
    return %c0_i32, %c0_i32_0 : i32, i32
  }
  func.func @transform_8(%arg0: i32) -> (i32, i32, i32) {
    %c0_i32 = arith.constant 0 : i32
    %c0_i32_0 = arith.constant 0 : i32
    %c0_i32_1 = arith.constant 0 : i32
    return %arg0, %c0_i32, %c0_i32_0 : i32, i32, i32
  }
}

</mosaic_0001>

<bundles_post_ra>
// kernel: tpu_custom_call.1
= control target key start
LH: loop header
LB: loop body
LE: loop exit
PB: predicated region body
PF: predicated region fallthrough
CT: control target
= control target key end

     0   :  { %13 = vsyncpa [#allocation4], 0  ;;  %s1956_s0 = inlined_call_operand.vmem [shape: bf16[2,4,256], index: 0, kind: input, shape index: {}]   ;;  %s1957_s1 = inlined_call_operand.vmem [shape: bf16[8,36], index: 1, kind: input, shape index: {}]   ;;  %s1958_s2 = inlined_call_operand.vmem [shape: f32[8,1], index: 2, kind: input, shape index: {}]   ;;  %s1959_s3 = inlined_call_operand.vmem [shape: bf16[8,72], index: 3, kind: input, shape index: {}]   ;;  %s1960_s4 = inlined_call_operand.vmem [shape: f32[8,1], index: 4, kind: input, shape index: {}]   ;;  %s1961_s5 = inlined_call_operand.vmem [shape: bf16[8,4], index: 5, kind: input, shape index: {}]   ;;  %s1962_s6 = inlined_call_operand.vmem [shape: f32[8,1], index: 6, kind: input, shape index: {}]   ;;  %s1963_s7 = inlined_call_operand.vmem [shape: f32[256,64], index: 7, kind: input, shape index: {}]   ;;  %s1964_s8 = inlined_call_operand.hbm [shape: f32[2,8,64], index: 8, kind: output, shape index: {}]  }
   0x1   :  { %15 = vsyncpa [#allocation4 + $0x1], 0  ;;  %s1520_s27 = smov 0   ;;  %s1522_s28 = smov 0  }
   0x2   :  { %s1524_s29 = smov 0   ;;  %s1526_s30 = smov 0  }
   0x3 LB: > { %s1541_s9 = sadd.s32 4294967295, %s1466_s30   ;;  %s1228_s10 = sadd.s32 4294967294, %s1466_s30   ;;  %s1466_s30 = sphi %s1526_s30, %s1986_s30   ;;  %s1462_s29 = sphi %s1524_s29, %s1985_s29   ;;  %s1458_s28 = sphi %s1522_s28, %s1984_s28   ;;  %s1454_s27 = sphi %s1520_s27, %s1983_s27  }
   0x4   : > { %s1545_s11 = sadd.s32 1, %s1466_s30   ;;  %s201_s12 = sadd.s32 1, %s1462_s29 }
   0x5   : > { %s198_s13 = ssub.s32 %s1466_s30, %s1545_s11  ;;  %p211_p0 = scmp.ne.s32.totalorder %s1462_s29, %s1458_s28 }
   0x6   : > { %p199_p1 = scmp.eq.s32.totalorder %s198_s13, 0  ;;  %p212_p2 = scmp.eq.s32.totalorder %s1541_s9, 1 }
   0x7   : > { %p217_p3 = scmp.ne.s32.totalorder %s1458_s28, %s1454_s27  ;;  %p218_p4 = scmp.eq.s32.totalorder %s1228_s10, 1 }
   0x8   : > { %s1556_s14 = scalar_select %p199_p1, %s1462_s29, %s201_s12  }
   0x9   : > { %p1558_p5 = por %p212_p2, %p211_p0  ;;  %p1562_p6 = por %p218_p4, %p217_p3 }
   0xa   : > { %p1231_p7 = scmp.ge.s32.totalorder %s1466_s30, 1  ;;  %p265_p8 = scmp.lt.s32.totalorder %s1466_s30, 3 }
   0xc   : > { %p266_p9 = pnand %p1231_p7, %p265_p8 }
   0xd   : > { %p299_p10 = scmp.lt.s32.totalorder (!%p266_p9), %s1541_s9, 1  ;;  %s1469_s22 = smov (!%p266_p9), 127  }
   0xe   : > { %269 = sbr.rel (%p266_p9) target bundleno = 1505 (0x5e1), region = 52  ;;  %s1470_s23 = smov (!%p266_p9), 1  }
   0xf   : > { %s1471_s24 = smov (!%p266_p9), 112   ;;  %s1472_s25 = smov (!%p266_p9), 16  }
  0x10   : > { %s296_s19 = sand.u32 (!%p266_p9), 1, %s1458_s28   ;;  %s1474_s13 = smov (!%p266_p9), [#allocation3]  }
  0x11   : > { %s1232_s20 = sshll.u32 (!%p266_p9), %s296_s19, 3  ;;  %s1156_s12 = scalar_lea.sflag (!%p266_p9), [#allocation4], %s296_s19 }
  0x13   : > { %v1468_v0 = vmov 0   ;;  %s300_s17 = scalar_select %p299_p10, %s1541_s9, 1  ;;  %v308_v3 = vlaneseq  ;;  %vm1473_vm8 = vmmov 0   ;;  %vm368_vm11 = vcmask 1039360   ;;  %v572_v63 = vld [vmem:[%s1958_s2] sm:$0xff] }
  0x14   : > { %646 = vmatprep.mubr.bf16.mxu1 %v1468_v0  ;;  %1361 = vset.pattern.permute.xlu0 %v1468_v0  ;;  %vm356_vm12 = vcmask 7168   ;;  %v844_v25 = vld [vmem:[%s1960_s4] sm:$0xff] }
  0x15   : > { %996 = vmatprep.mubr.bf16.mxu0 %v1468_v0  ;;  %1362 = vset.pattern.permute.xlu1 %v1468_v0  ;;  %s1279_s18 = sshll.u32 %s300_s17, 2  ;;  %v309_v4 = vand.u32 127, %v308_v3  ;;  %v379_v8 = vshrl.u32 %v308_v3, 7  ;;  %s1410_s17 = sshll.u32 %s1474_s13, 4  ;;  %s1411_s17 = int_to_ptr.vmem [resolvable:$false] %s1410_s17 }
  0x16   : > { %s303_s21 = scalar_lea.vmem %s1956_s0, %s1279_s18 }
  0x17   : > { %v1577_v1 = vld.sshfl [vmem:[%s303_s21] sm:$0x33 pattern:$0x76325410]  ;;  %v310_v5 = vadd.s32 128, %v309_v4  ;;  %v315_v6 = vand.u32 15, %v309_v4 }
  0x18   : > { %364 = vrot.lane.b32.xlu1 %v1577_v1, %s1469_s22  ;;  %511 = vst [vmem:[#allocation2 + $0x18] sm:$0x33] %v1577_v1  ;;  %v1584_v2 = vcombine.high %v1577_v1, %v1577_v1  ;;  %v380_v9 = vsub.s32 0, %v379_v8  ;;  %v384_v10 = vsub.s32 4, %v379_v8  ;;  %vm339_vm7 = vcmp.lt.s32.totalorder %v309_v4, 16  ;;  %s1276_s21 = sshll.u32 %s1541_s9, 7 }
  0x19   : > { %v322_v7 = vand.u32 15, %v310_v5  ;;  %vm337_vm0 = vcmp.eq.s32.totalorder %v315_v6, 15  ;;  %vm335_vm2 = vcmp.eq.s32.totalorder %v315_v6, 0  ;;  %vm342_vm6 = vcmp.ge.s32.totalorder %v310_v5, 240  ;;  %vm430_vm10 = vmpackc.low %vm1473_vm8, %vm339_vm7  ;;  %s1167_s10 = scalar_lea.hbm %s1964_s8, %s1276_s21  ;;  %s1412_s9 = scalar_lea.vmem %s1411_s17, 256 }
  0x1a   : > { %352 = vrot.lane.b32.xlu0 %v1584_v2, %s1470_s23  ;;  %vm444_vm9 = vmpackc.low %vm342_vm6, %vm1473_vm8  ;;  %v431_v19 = vsel %vm430_vm10, 65537, %v1468_v0  ;;  %vm607_vm7 = vcmask 1041408   ;;  %vm603_vm8 = vcmask 293888   ;;  %vm899_vm10 = vcmask 1043456  }
  0x1b   : > { %vm338_vm1 = vcmp.eq.s32.totalorder %v322_v7, 15  ;;  %vm336_vm3 = vcmp.eq.s32.totalorder %v322_v7, 0  ;;  %v445_v20 = vsel %vm444_vm9, 65537, %v1468_v0  ;;  %v435_v27 = vrot.slane %v431_v19, %v380_v9  ;;  %1273 = vmatprep.subr.msk.bf16.mxu0 %vm607_vm7, %v1584_v2 }
  0x1c   : > { %366 = vrot.lane.b32.xlu1 %v1584_v2, %s1469_s22  ;;  %vm390_vm4 = vmpackc.low %vm338_vm1, %vm337_vm0  ;;  %v449_v28 = vrot.slane %v445_v20, %v380_v9  ;;  %v453_v29 = vrot.slane %v445_v20, %v384_v10  ;;  %v439_v41 = vrot.slane %v431_v19, %v384_v10  ;;  %vm410_vm1 = vcmask 916480  }
  0x1d   : > { %vm376_vm5 = vmpackc.low %vm336_vm3, %vm335_vm2  ;;  %v391_v11 = vsel %vm390_vm4, 65537, %v1468_v0  ;;  %vm422_vm2 = vcmask 130048   ;;  %vm1634_vm3 = vcmp.ne.s16.totalorder %v435_v27, 0  ;;  %v959_v24 = vsel %vm607_vm7, %v1577_v1, 0 }
  0x1e   : > { %354 = vrot.lane.b32.xlu0 %v1577_v1, %s1470_s23  ;;  %v377_v12 = vsel %vm376_vm5, 65537, %v1468_v0  ;;  %v395_v14 = vrot.slane %v391_v11, %v380_v9  ;;  %v399_v15 = vrot.slane %v391_v11, %v384_v10  ;;  %vm1638_vm4 = vcmp.ne.s16.totalorder %v449_v28, 0  ;;  %979 = vmatpush1.bf16.msra.mxu0 %v959_v24 }
  0x1f   : > { %v381_v16 = vrot.slane %v377_v12, %v380_v9  ;;  %v385_v17 = vrot.slane %v377_v12, %v384_v10  ;;  %vm1642_vm5 = vcmp.ne.s16.totalorder %v453_v29, 0  ;;  %vm1650_vm6 = vcmp.ne.s16.totalorder %v439_v41, 0 }
  0x20   : > { %480 = vrot.lane.b32.xlu1 %v1584_v2, %s1471_s24  ;;  %vm1604_vm13 = vcmp.ne.s16.totalorder %v395_v14, 0  ;;  %vm1608_vm14 = vcmp.ne.s16.totalorder %v399_v15, 0  ;;  %vm954_vm9 = vcmask 31744  }
  0x21   : > { %vm1612_vm15 = vcmp.ne.s16.totalorder %v381_v16, 0  ;;  %vm1616_vm0 = vcmp.ne.s16.totalorder %v385_v17, 0 }
  0x22   : > { %478 = vrot.lane.b32.xlu0 %v1577_v1, %s1471_s24 }
  0x24   : > { %490 = vrot.lane.b32.xlu1 %v1577_v1, %s1472_s25  ;;  %v948_v1 = vld [vmem:[%s1962_s6] sm:$0xff] }
  0x26   : > { %488 = vrot.lane.b32.xlu0 %v1584_v2, %s1472_s25 }
  0x8a   : > { %v365_v13 = vpop.permute.xlu1 %364 }
  0x8c   : > { %v353_v18 = vpop.permute.xlu0 %352 }
  0x8e   : > { %v367_v21 = vpop.permute.xlu1 %366 }
  0x8f   : > { %v369_v30 = vsel %vm368_vm11, %v365_v13, %v367_v21  ;;  %v374_v31 = vsel %vm368_vm11, %v367_v21, %v365_v13 }
  0x90   : > { %v355_v26 = vpop.permute.xlu0 %354 }
  0x91   : > { %v357_v32 = vsel %vm356_vm12, %v355_v26, %v353_v18  ;;  %v362_v33 = vsel %vm356_vm12, %v353_v18, %v355_v26 }
  0x92   : > { %v402_v34 = vsel %vm1604_vm13, %v362_v33, %v369_v30  ;;  %v403_v35 = vsel %vm1608_vm14, %v357_v32, %v374_v31  ;;  %v388_v36 = vsel %vm1612_vm15, %v369_v30, %v362_v33  ;;  %v389_v37 = vsel %vm1616_vm0, %v374_v31, %v357_v32  ;;  %v481_v38 = vpop.permute.xlu1 %480 }
  0x93   : > { %522 = vrot.lane.b32.xlu0 %v402_v34, %s1471_s24  ;;  %524 = vrot.lane.b32.xlu1 %v403_v35, %s1471_s24  ;;  %v1242_v39 = vcombine.low %v402_v34, %v403_v35  ;;  %v1237_v40 = vcombine.low %v388_v36, %v389_v37 }
  0x94   : > { %v479_v42 = vpop.permute.xlu0 %478 }
  0x95   : > { %v556_v43 = vrot.slane %v1242_v39, 6  ;;  %v468_v44 = vrot.slane %v1237_v40, 6  ;;  %v482_v49 = vsel %vm410_vm1, %v479_v42, %v481_v38  ;;  %v486_v50 = vsel %vm410_vm1, %v481_v38, %v479_v42  ;;  %v566_v42 = vld [vmem:[%s1957_s1] sm:$0xf] }
  0x96   : > { %v491_v45 = vpop.permute.xlu1 %490 }
  0x97   : > { %558 = vst [vmem:[#allocation2 + $0x18] sm:$0xcc] %v556_v43  ;;  %532 = vrot.lane.b32.xlu0 %v403_v35, %s1472_s25  ;;  %534 = vrot.lane.b32.xlu1 %v402_v34, %s1472_s25  ;;  %470 = vst [vmem:[#allocation2] sm:$0xcc] %v468_v44 }
  0x98   : > { %v489_v52 = vpop.permute.xlu0 %488 }
  0x99   : > { %v492_v53 = vsel %vm422_vm2, %v491_v45, %v489_v52  ;;  %v496_v54 = vsel %vm422_vm2, %v489_v52, %v491_v45 }
  0x9a   : > { %v498_v55 = vsel %vm1634_vm3, %v482_v49, %v496_v54  ;;  %v499_v56 = vsel %vm1650_vm6, %v486_v50, %v492_v53  ;;  %v500_v57 = vsel %vm1638_vm4, %v496_v54, %v482_v49  ;;  %v501_v58 = vsel %vm1642_vm5, %v492_v53, %v486_v50 }
  0x9b   : > { %406 = vrot.lane.b32.xlu0 %v388_v36, %s1471_s24  ;;  %408 = vrot.lane.b32.xlu1 %v389_v37, %s1471_s24  ;;  %v1239_v59 = vcombine.low %v498_v55, %v499_v56  ;;  %v1240_v60 = vcombine.low %v500_v57, %v501_v58 }
  0x9d   : > { %v507_v61 = vrot.slane %v1239_v59, 6  ;;  %v517_v62 = vrot.slane %v1240_v60, 6 }
  0x9f   : > { %418 = vrot.lane.b32.xlu0 %v389_v37, %s1472_s25  ;;  %420 = vrot.lane.b32.xlu1 %v388_v36, %s1472_s25  ;;  %509 = vst [vmem:[#allocation2 + $0x38] sm:$0xcc] %v507_v61  ;;  %519 = vst [vmem:[#allocation2 + $0x10] sm:$0xcc] %v517_v62 }
  0xa3   : > { %575 = vperm.xlu0 %1361, %v572_v63  }
 0x105   : > { %v525_v2 = vpop.permute.xlu1 %524  ;;  %v523_v3 = vpop.permute.xlu0 %522 }
 0x106   : > { %v526_v6 = vsel %vm410_vm1, %v523_v3, %v525_v2  ;;  %v530_v7 = vsel %vm410_vm1, %v525_v2, %v523_v3 }
 0x109   : > { %v535_v4 = vpop.permute.xlu1 %534  ;;  %v533_v5 = vpop.permute.xlu0 %532 }
 0x10a   : > { %v536_v8 = vsel %vm422_vm2, %v535_v4, %v533_v5  ;;  %v540_v9 = vsel %vm422_vm2, %v533_v5, %v535_v4 }
 0x10b   : > { %v542_v10 = vsel %vm1634_vm3, %v526_v6, %v540_v9  ;;  %v543_v11 = vsel %vm1650_vm6, %v530_v7, %v536_v8  ;;  %v544_v12 = vsel %vm1638_vm4, %v540_v9, %v526_v6  ;;  %v545_v13 = vsel %vm1642_vm5, %v536_v8, %v530_v7 }
 0x10c   : > { %v1241_v14 = vcombine.low %v542_v10, %v543_v11  ;;  %v1243_v15 = vcombine.low %v544_v12, %v545_v13 }
 0x10d   : > { %v409_v16 = vpop.permute.xlu1 %408  ;;  %v407_v17 = vpop.permute.xlu0 %406 }
 0x10e   : > { %552 = vst [vmem:[#allocation2] sm:$0x33] %v1241_v14  ;;  %565 = vst [vmem:[#allocation2 + $0x20] sm:$0x33] %v1243_v15  ;;  %v411_v20 = vsel %vm410_vm1, %v407_v17, %v409_v16  ;;  %v416_v21 = vsel %vm410_vm1, %v409_v16, %v407_v17 }
 0x111   : > { %v421_v18 = vpop.permute.xlu1 %420  ;;  %v419_v19 = vpop.permute.xlu0 %418 }
 0x112   : > { %v423_v26 = vsel %vm422_vm2, %v421_v18, %v419_v19  ;;  %v428_v27 = vsel %vm422_vm2, %v419_v19, %v421_v18 }
 0x113   : > { %v442_v28 = vsel %vm1634_vm3, %v411_v20, %v428_v27  ;;  %v443_v29 = vsel %vm1650_vm6, %v416_v21, %v423_v26  ;;  %v456_v30 = vsel %vm1638_vm4, %v428_v27, %v411_v20  ;;  %v457_v31 = vsel %vm1642_vm5, %v423_v26, %v416_v21 }
 0x114   : > { %v1236_v32 = vcombine.low %v442_v28, %v443_v29  ;;  %v1238_v33 = vcombine.low %v456_v30, %v457_v31  ;;  %v947_v28 = vld [vmem:[%s1961_s5] sm:$0xf] }
 0x115   : > { %v571_v34 = vld [vmem:[#allocation2 + $0x20] sm:$0x33]  ;;  %1274 = vmatmul.mubr.msk.bf16.vlgmr.msra.gmra.mxu0 %vm954_vm9, %v947_v28 }
 0x116   : > { %464 = vst [vmem:[#allocation2 + $0x38] sm:$0x33] %v1236_v32  ;;  %477 = vst [vmem:[#allocation2 + $0x10] sm:$0x33] %v1238_v33  ;;  %v1249_v35 = vcombine.high %v571_v34, %v571_v34  ;;  %v1248_v36 = vcombine.low %v571_v34, %v571_v34 }
 0x118   : > { %1250 = vmatprep.subr.msk.bf16.mxu1 %vm607_vm7, %v1249_v35  ;;  %v609_v37 = vsel %vm607_vm7, %v1248_v36, 0 }
 0x119   : > { %625 = vmatpush1.bf16.msra.mxu1 %v609_v37 }
 0x11d   : > { %v1375_v38 = vld [vmem:[#allocation2 + $0x1c] ss:$-8 sps:$4 sm:$0xff]   ;;  %v1377_v39 = vld [vmem:[#allocation2 + $0x18] ss:$-8 sps:$4 sm:$0xff]  }
 0x11e   : > { %626 = vmatprep.subr.bf16.mxu1 %v1375_v38  ;;  %v1378_v40 = vld [vmem:[#allocation2 + $0x3c] ss:$-56 sps:$4 sm:$0xff]   ;;  %v1380_v41 = vld [vmem:[#allocation2 + $0x38] ss:$-56 sps:$4 sm:$0xff]   ;;  %v576_v43 = vpop.permute.xlu0 %575 }
 0x11f   : > { %627 = vmatpush1.bf16.msra.mxu1 %v1377_v39 }
 0x120   : > { %628 = vmatprep.subr.bf16.mxu1 %v1378_v40 }
 0x123   : > { %629 = vmatpush1.bf16.msra.mxu1 %v1380_v41 }
 0x126   : > { %1251 = vmatmul.mubr.msk.bf16.vlgmr.msra.gmra.mxu1 %vm603_vm8, %v566_v42 }
 0x127   : > { %938 = vmatprep.mubr.bf16.mxu1 %v1468_v0 }
 0x1e6   : > { %v648_v44 = vpop.f32.mrf.mxu1 }
 0x1e7   : > { %v649_v45 = vadd.f32 %v648_v44, %v576_v43 }
 0x1e8   : > { %v650_v49 = vpop.f32.mrf.mxu1 }
 0x1e9   : > { %v655_v50 = vmin.f32 %v649_v45, 20.0  ;;  %v651_v52 = vadd.f32 %v650_v49, %v576_v43 }
 0x1ea   : > { %v652_v53 = vpop.f32.mrf.mxu1 }
 0x1eb   : > { %v657_v54 = vmul.f32 1.442695, %v655_v50  ;;  %v656_v55 = vmin.f32 %v651_v52, 20.0 }
 0x1ec   : > { %v653_v56 = vpop.f32.mrf.mxu1 }
 0x1ed   : > { %1381 = vpow2.f32 %v657_v54  ;;  %v659_v57 = vmul.f32 1.442695, %v656_v55 }
 0x1ef   : > { %1383 = vpow2.f32 %v659_v57 }
 0x1fa   : > { %v1382_v58 = vpop.eup %1381 }
 0x1fb   : > { %v661_v59 = vadd.f32 2.0, %v1382_v58 }
 0x1fc   : > { %v1384_v60 = vpop.eup %1383 }
 0x1fd   : > { %v663_v61 = vmul.f32 %v1382_v58, %v661_v59  ;;  %v662_v62 = vadd.f32 2.0, %v1384_v60 }
 0x1ff   : > { %v665_v63 = vadd.f32 2.0, %v663_v61  ;;  %v664_v0 = vmul.f32 %v1384_v60, %v662_v62 }
 0x201   : > { %1385 = vrcp.f32 %v665_v63  ;;  %v666_v2 = vadd.f32 2.0, %v664_v0 }
 0x203   : > { %1387 = vrcp.f32 %v666_v2 }
 0x20e   : > { %v1386_v3 = vpop.eup %1385 }
 0x20f   : > { %v669_v4 = vmul.f32 %v1386_v3, %v663_v61 }
 0x210   : > { %v1388_v5 = vpop.eup %1387 }
 0x211   : > { %v671_v6 = vmul.f32 %v669_v4, %v649_v45  ;;  %v670_v7 = vmul.f32 %v1388_v5, %v664_v0 }
 0x213   : > { %v673_v8 = vpack.c.bf16 %v671_v6, %v671_v6  ;;  %v672_v9 = vmul.f32 %v670_v7, %v651_v52 }
 0x215   : > { %v1703_v10 = vpack.c.bf16 %v672_v9, %v671_v6  ;;  %687 = vrot.lane.b32.xlu0 %v673_v8, %s1469_s22  ;;  %679 = vrot.lane.b32.xlu1 %v673_v8, %s1470_s23  ;;  %v674_v11 = vpack.c.bf16 %v672_v9, %v672_v9 }
 0x217   : > { %781 = vst [vmem:[#allocation2 + $0x20] sm:$0xff] %v1703_v10 }
 0x219   : > { %746 = vrot.lane.b32.xlu0 %v673_v8, %s1471_s24  ;;  %676 = vrot.lane.b32.xlu1 %v674_v11, %s1470_s23  ;;  %s298_s23 = scalar_lea.vmem [#allocation3], %s1232_s20 }
 0x21d   : > { %689 = vrot.lane.b32.xlu1 %v674_v11, %s1469_s22 }
 0x221   : > { %748 = vrot.lane.b32.xlu1 %v674_v11, %s1471_s24 }
 0x287   : > { %v680_v12 = vpop.permute.xlu1 %679  ;;  %v688_v14 = vpop.permute.xlu0 %687 }
 0x28b   : > { %v677_v13 = vpop.permute.xlu1 %676  ;;  %v747_v29 = vpop.permute.xlu0 %746 }
 0x28c   : > { %v681_v16 = vsel %vm356_vm12, %v680_v12, %v677_v13  ;;  %v685_v17 = vsel %vm356_vm12, %v677_v13, %v680_v12  ;;  %vm895_vm12 = vcmask 588800  }
 0x28f   : > { %v690_v15 = vpop.permute.xlu1 %689 }
 0x290   : > { %v691_v18 = vsel %vm368_vm11, %v688_v14, %v690_v15  ;;  %v695_v19 = vsel %vm368_vm11, %v690_v15, %v688_v14 }
 0x291   : > { %v1718_v20 = vsel %vm1608_vm14, %v681_v16, %v695_v19  ;;  %v1722_v21 = vsel %vm1604_vm13, %v685_v17, %v691_v18  ;;  %v1726_v26 = vsel %vm1616_vm0, %v695_v19, %v681_v16  ;;  %v1730_v27 = vsel %vm1612_vm15, %v691_v18, %v685_v17  ;;  %v834_v17 = vld [vmem:[%s1959_s3] sm:$0xf]  ;;  %v998_v18 = vpop.f32.mrf.mxu0 }
 0x292   : > { %793 = vrot.lane.b32.xlu1 %v1718_v20, %s1471_s24  ;;  %791 = vrot.lane.b32.xlu0 %v1722_v21, %s1471_s24  ;;  %v1259_v23 = vcombine.low %v1722_v21, %v1718_v20  ;;  %v1253_v22 = vcombine.low %v1730_v27, %v1726_v26  ;;  %v1401_v51 = vcombine.low %v1703_v10, %v1722_v21 }
 0x293   : > { %v749_v30 = vpop.permute.xlu1 %748  ;;  %v1000_v19 = vpop.f32.mrf.mxu0 }
 0x294   : > { %738 = vst [vmem:[#allocation2 + $0x10] sm:$0xff] %v1253_v22  ;;  %v750_v3 = vsel %vm410_vm1, %v747_v29, %v749_v30  ;;  %v754_v4 = vsel %vm410_vm1, %v749_v30, %v747_v29  ;;  %v1266_v46 = vcombine.high %v1703_v10, %v1259_v23 }
 0x295   : > { %v1002_v10 = vpop.f32.mrf.mxu0 }
 0x296   : > { %803 = vrot.lane.b32.xlu1 %v1722_v21, %s1472_s25  ;;  %801 = vrot.lane.b32.xlu0 %v1718_v20, %s1472_s25  ;;  %v1051_v10 = vld [vmem:[%s1963_s7] sm:$0xff] }
 0x297   : > { %v1003_v20 = vpop.f32.mrf.mxu0 }
 0x29a   : > { %705 = vrot.lane.b32.xlu1 %v1726_v26, %s1471_s24  ;;  %703 = vrot.lane.b32.xlu0 %v1730_v27, %s1471_s24 }
 0x29e   : > { %715 = vrot.lane.b32.xlu1 %v1730_v27, %s1472_s25  ;;  %713 = vrot.lane.b32.xlu0 %v1726_v26, %s1472_s25 }
 0x2a2   : > { %758 = vrot.lane.b32.xlu1 %v673_v8, %s1472_s25  ;;  %756 = vrot.lane.b32.xlu0 %v674_v11, %s1472_s25  ;;  %s1169_s25 = sshll.u32 %s298_s23, 4  ;;  %s1170_s25 = int_to_ptr.vmem [resolvable:$true] %s1169_s25 }
 0x2a3   : > { %p1413_p0 = scmp.lt.s32.totalorder %s1170_s25, %s1411_s17 }
 0x2a6   : > { %847 = vperm.xlu0 %1361, %v844_v25   ;;  %951 = vperm.xlu1 %1362, %v948_v1  }
 0x304   : > { %v792_v31 = vpop.permute.xlu0 %791  ;;  %v794_v32 = vpop.permute.xlu1 %793 }
 0x305   : > { %v795_v35 = vsel %vm410_vm1, %v792_v31, %v794_v32  ;;  %v799_v36 = vsel %vm410_vm1, %v794_v32, %v792_v31 }
 0x308   : > { %v802_v33 = vpop.permute.xlu0 %801  ;;  %v804_v34 = vpop.permute.xlu1 %803 }
 0x309   : > { %v805_v37 = vsel %vm422_vm2, %v804_v34, %v802_v33  ;;  %v809_v38 = vsel %vm422_vm2, %v802_v33, %v804_v34 }
 0x30a   : > { %v811_v39 = vsel %vm1634_vm3, %v795_v35, %v809_v38  ;;  %v812_v40 = vsel %vm1650_vm6, %v799_v36, %v805_v37  ;;  %v813_v41 = vsel %vm1638_vm4, %v809_v38, %v795_v35  ;;  %v814_v42 = vsel %vm1642_vm5, %v805_v37, %v799_v36 }
 0x30b   : > { %v1258_v43 = vcombine.low %v811_v39, %v812_v40  ;;  %v1397_v49 = vcombine.low %v814_v42, %v814_v42  ;;  %v1398_v50 = vcombine.low %v813_v41, %v813_v41  ;;  %v1402_v47 = vcombine.low %v812_v40, %v1726_v26 }
 0x30c   : > { %v704_v44 = vpop.permute.xlu0 %703  ;;  %v706_v45 = vpop.permute.xlu1 %705  ;;  %v1403_v48 = vcombine.low %v811_v39, %v1730_v27 }
 0x30d   : > { %821 = vst [vmem:[#allocation2 + $0x18] sm:$0xff] %v1258_v43  ;;  %1271 = vmatprep.subr.msk.bf16.mxu1 %vm899_vm10, %v1397_v49  ;;  %v901_v52 = vsel %vm899_vm10, %v1398_v50, 0  ;;  %v707_v55 = vsel %vm410_vm1, %v704_v44, %v706_v45  ;;  %v711_v56 = vsel %vm410_vm1, %v706_v45, %v704_v44 }
 0x30e   : > { %913 = vmatpush1.bf16.msra.mxu1 %v901_v52  ;;  %v1082_v52 = vld [vmem:[%s1963_s7 + $0xf8] sm:$0xff] }
 0x30f   : > { %1281 = vmatprep.subr.mxu0 %v1082_v52 }
 0x310   : > { %v714_v53 = vpop.permute.xlu0 %713  ;;  %v716_v54 = vpop.permute.xlu1 %715 }
 0x311   : > { %v717_v57 = vsel %vm422_vm2, %v716_v54, %v714_v53  ;;  %v721_v58 = vsel %vm422_vm2, %v714_v53, %v716_v54  ;;  %v1066_v53 = vld [vmem:[%s1963_s7 + $0x78] sm:$0xff]  ;;  %v1081_v54 = vld [vmem:[%s1963_s7 + $0xf0] sm:$0xff] }
 0x312   : > { %v723_v59 = vsel %vm1634_vm3, %v707_v55, %v721_v58  ;;  %v724_v60 = vsel %vm1650_vm6, %v711_v56, %v717_v57  ;;  %v725_v61 = vsel %vm1638_vm4, %v721_v58, %v707_v55  ;;  %v726_v62 = vsel %vm1642_vm5, %v717_v57, %v711_v56  ;;  %v1065_v55 = vld [vmem:[%s1963_s7 + $0x70] sm:$0xff]  ;;  %1282 = vmatpush3.msra.mxu0 %v1066_v53  ;;  %v1080_v58 = vld [vmem:[%s1963_s7 + $0xe8] sm:$0xff] }
 0x313   : > { %v1252_v63 = vcombine.low %v723_v59, %v724_v60  ;;  %1283 = vmatprep.subr.mxu0 %v1081_v54 }
 0x314   : > { %v757_v0 = vpop.permute.xlu0 %756  ;;  %v759_v2 = vpop.permute.xlu1 %758  ;;  %1284 = vmatpush3.msra.mxu0 %v1065_v55 }
 0x315   : > { %733 = vst [vmem:[#allocation2 + $0x38] sm:$0xff] %v1252_v63  ;;  %v760_v5 = vsel %vm422_vm2, %v759_v2, %v757_v0  ;;  %v764_v6 = vsel %vm422_vm2, %v757_v0, %v759_v2  ;;  %1285 = vmatprep.subr.mxu0 %v1080_v58  ;;  %v1078_v63 = vld [vmem:[%s1963_s7 + $0xd8] sm:$0xff]  ;;  %v1077_v2 = vld [vmem:[%s1963_s7 + $0xd0] sm:$0xff] }
 0x316   : > { %v766_v7 = vsel %vm1634_vm3, %v750_v3, %v764_v6  ;;  %v767_v8 = vsel %vm1650_vm6, %v754_v4, %v760_v5  ;;  %v768_v9 = vsel %vm1638_vm4, %v764_v6, %v750_v3  ;;  %v769_v11 = vsel %vm1642_vm5, %v760_v5, %v754_v4  ;;  %v1062_v0 = vld [vmem:[%s1963_s7 + $0x58] sm:$0xff]  ;;  %v1061_v3 = vld [vmem:[%s1963_s7 + $0x50] sm:$0xff]  ;;  %v1076_v4 = vld [vmem:[%s1963_s7 + $0xc8] sm:$0xff] }
 0x317   : > { %v1255_v12 = vcombine.low %v766_v7, %v767_v8  ;;  %v1399_v13 = vcombine.low %v725_v61, %v768_v9  ;;  %v1400_v14 = vcombine.low %v726_v62, %v769_v11  ;;  %v1404_v15 = vcombine.low %v724_v60, %v767_v8  ;;  %v1079_v61 = vld [vmem:[%s1963_s7 + $0xe0] sm:$0xff]  ;;  %v1060_v5 = vld [vmem:[%s1963_s7 + $0x48] sm:$0xff]  ;;  %v1074_v8 = vld [vmem:[%s1963_s7 + $0xb8] sm:$0xff] }
 0x318   : > { %v1405_v16 = vcombine.low %v723_v59, %v766_v7  ;;  %v1064_v59 = vld [vmem:[%s1963_s7 + $0x68] sm:$0xff]  ;;  %v1063_v62 = vld [vmem:[%s1963_s7 + $0x60] sm:$0xff]  ;;  %v1058_v9 = vld [vmem:[%s1963_s7 + $0x38] sm:$0xff] }
 0x319   : > { %776 = vst [vmem:[#allocation2] sm:$0xff] %v1255_v12  ;;  %914 = vmatprep.subr.bf16.mxu1 %v1400_v14  ;;  %1286 = vmatpush3.msra.mxu0 %v1064_v59  ;;  %v1075_v6 = vld [vmem:[%s1963_s7 + $0xc0] sm:$0xff]  ;;  %v1073_v11 = vld [vmem:[%s1963_s7 + $0xb0] sm:$0xff]  ;;  %v1056_v14 = vld [vmem:[%s1963_s7 + $0x28] sm:$0xff] }
 0x31a   : > { %915 = vmatpush1.bf16.msra.mxu1 %v1399_v13  ;;  %1287 = vmatprep.subr.mxu0 %v1079_v61  ;;  %v1059_v7 = vld [vmem:[%s1963_s7 + $0x40] sm:$0xff]  ;;  %v1057_v12 = vld [vmem:[%s1963_s7 + $0x30] sm:$0xff]  ;;  %v1072_v13 = vld [vmem:[%s1963_s7 + $0xa8] sm:$0xff] }
 0x31b   : > { %916 = vmatprep.subr.bf16.mxu1 %v1266_v46  ;;  %1288 = vmatpush3.msra.mxu0 %v1063_v62  ;;  %v1071_v46 = vld [vmem:[%s1963_s7 + $0xa0] sm:$0xff] }
 0x31c   : > { %1289 = vmatprep.subr.mxu0 %v1078_v63 }
 0x31d   : > { %1290 = vmatpush3.msra.mxu0 %v1062_v0 }
 0x31e   : > { %917 = vmatpush1.bf16.msra.mxu1 %v1401_v51  ;;  %1291 = vmatprep.subr.mxu0 %v1077_v2  ;;  %v1055_v51 = vld [vmem:[%s1963_s7 + $0x20] sm:$0xff] }
 0x31f   : > { %918 = vmatprep.subr.bf16.mxu1 %v1402_v47  ;;  %1292 = vmatpush3.msra.mxu0 %v1061_v3  ;;  %v1070_v47 = vld [vmem:[%s1963_s7 + $0x98] sm:$0xff] }
 0x320   : > { %1293 = vmatprep.subr.mxu0 %v1076_v4 }
 0x321   : > { %v952_v21 = vpop.permute.xlu1 %951  ;;  %v848_v23 = vpop.permute.xlu0 %847  ;;  %1294 = vmatpush3.msra.mxu0 %v1060_v5 }
 0x322   : > { %919 = vmatpush1.bf16.msra.mxu1 %v1403_v48  ;;  %v999_v26 = vadd.f32 %v998_v18, %v952_v21  ;;  %v1001_v25 = vadd.f32 %v1000_v19, %v952_v21  ;;  %1295 = vmatprep.subr.mxu0 %v1075_v6  ;;  %v1054_v48 = vld [vmem:[%s1963_s7 + $0x18] sm:$0xff]  ;;  %v1052_v18 = vld [vmem:[%s1963_s7 + $0x8] sm:$0xff]  ;;  %v1067_v19 = vld [vmem:[%s1963_s7 + $0x80] sm:$0xff] }
 0x323   : > { %920 = vmatprep.subr.bf16.mxu1 %v1404_v15  ;;  %1296 = vmatpush3.msra.mxu0 %v1059_v7  ;;  %v1069_v15 = vld [vmem:[%s1963_s7 + $0x90] sm:$0xff] }
 0x324   : > { %1297 = vmatprep.subr.mxu0 %v1074_v8 }
 0x325   : > { %1298 = vmatpush3.msra.mxu0 %v1058_v9 }
 0x326   : > { %921 = vmatpush1.bf16.msra.mxu1 %v1405_v16  ;;  %1299 = vmatprep.subr.mxu0 %v1073_v11  ;;  %v1053_v16 = vld [vmem:[%s1963_s7 + $0x10] sm:$0xff] }
 0x327   : > { %1300 = vmatpush3.msra.mxu0 %v1057_v12 }
 0x328   : > { %1301 = vmatprep.subr.mxu0 %v1072_v13 }
 0x329   : > { %1272 = vmatmul.mubr.msk.bf16.vlgmr.msra.gmra.mxu1 %vm895_vm12, %v834_v17  ;;  %1302 = vmatpush3.msra.mxu0 %v1056_v14  ;;  %v1068_v17 = vld [vmem:[%s1963_s7 + $0x88] sm:$0xff] }
 0x32a   : > { %1303 = vmatprep.subr.mxu0 %v1071_v46 }
 0x32b   : > { %1304 = vmatpush3.msra.mxu0 %v1055_v51 }
 0x32c   : > { %1305 = vmatprep.subr.mxu0 %v1070_v47 }
 0x32d   : > { %1306 = vmatpush3.msra.mxu0 %v1054_v48 }
 0x32e   : > { %1307 = vmatprep.subr.mxu0 %v1069_v15 }
 0x32f   : > { %1308 = vmatpush3.msra.mxu0 %v1053_v16 }
 0x330   : > { %1309 = vmatprep.subr.mxu0 %v1068_v17 }
 0x331   : > { %1310 = vmatpush3.msra.mxu0 %v1052_v18 }
 0x332   : > { %1311 = vmatprep.subr.mxu0 %v1067_v19 }
 0x333   : > { %1312 = vmatpush3.msra.mxu0 %v1051_v10 }
 0x3e9   : > { %v940_v22 = vpop.f32.mrf.mxu1 }
 0x3ea   : > { %v941_v27 = vadd.f32 %v940_v22, %v848_v23 }
 0x3eb   : > { %v942_v24 = vpop.f32.mrf.mxu1 }
 0x3ec   : > { %v1005_v28 = vadd.f32 %v999_v26, %v941_v27  ;;  %v943_v1 = vadd.f32 %v942_v24, %v848_v23 }
 0x3ed   : > { %v944_v29 = vpop.f32.mrf.mxu1 }
 0x3ee   : > { %v1007_v30 = vmin.f32 %v1005_v28, 20.0  ;;  %v1006_v31 = vadd.f32 %v1001_v25, %v943_v1 }
 0x3ef   : > { %v945_v32 = vpop.f32.mrf.mxu1 }
 0x3f0   : > { %v1009_v33 = vmul.f32 1.442695, %v1007_v30  ;;  %v1008_v34 = vmin.f32 %v1006_v31, 20.0 }
 0x3f2   : > { %1389 = vpow2.f32 %v1009_v33  ;;  %v1011_v35 = vmul.f32 1.442695, %v1008_v34 }
 0x3f4   : > { %1391 = vpow2.f32 %v1011_v35 }
 0x3ff   : > { %v1390_v36 = vpop.eup %1389 }
 0x400   : > { %v1013_v37 = vadd.f32 2.0, %v1390_v36 }
 0x401   : > { %v1392_v38 = vpop.eup %1391 }
 0x402   : > { %v1015_v39 = vmul.f32 %v1390_v36, %v1013_v37  ;;  %v1014_v40 = vadd.f32 2.0, %v1392_v38 }
 0x404   : > { %v1017_v41 = vadd.f32 2.0, %v1015_v39  ;;  %v1016_v42 = vmul.f32 %v1392_v38, %v1014_v40 }
 0x406   : > { %1393 = vrcp.f32 %v1017_v41  ;;  %v1018_v43 = vadd.f32 2.0, %v1016_v42 }
 0x408   : > { %1395 = vrcp.f32 %v1018_v43 }
 0x413   : > { %v1394_v44 = vpop.eup %1393 }
 0x414   : > { %v1021_v45 = vmul.f32 %v1394_v44, %v1015_v39 }
 0x415   : > { %v1396_v49 = vpop.eup %1395 }
 0x416   : > { %v1022_v50 = vmul.f32 %v1396_v49, %v1016_v42  ;;  %v1824_v56 = vmul.f32 %v1021_v45, %v1005_v28 }
 0x418   : > { %v1826_v57 = vmul.f32 %v1022_v50, %v1006_v31 }
 0x41a   : > { %v1363_v60 = vpack.i.bf16 %v1826_v57, %v1824_v56 }
 0x41c   : > { %1364 = vrot.lane.b32.xlu0 %v1363_v60, %s1469_s22  ;;  %s1406_s22 = scalar_lea.vmem %s1170_s25, 128 }
 0x41d   : > { %p1407_p11 = scmp.ne.s32.totalorder %s1170_s25, %s1406_s22  ;;  %p1414_p1 = scmp.lt.s32.totalorder %s1412_s9, %s1406_s22 }
 0x41f   : > { %p1408_p12 = pnand %p1407_p11, %p1558_p5  ;;  %p1415_p2 = por %p1414_p1, %p1413_p0 }
 0x421   : > { %p1409_p13 = pneg %p1408_p12 }
 0x423   : > { %p1416_p3 = pnand %p1415_p2, %p1409_p13 }
 0x48e   : > { %v1365_v20 = vpop.permute.xlu0 %1364 }
 0x48f   : > { %v1367_v21 = vunpack.i.h.bf16 %v1365_v20  ;;  %v1366_v26 = vunpack.i.l.bf16 %v1365_v20 }
 0x491   : > { %v1031_v23 = vsel %vm368_vm11, %v1366_v26, %v1367_v21  ;;  %v1035_v22 = vsel %vm368_vm11, %v1367_v21, %v1366_v26  ;;  %vm1153_vm11 = vcmask 523264  }
 0x492   : > { %v1036_v27 = vmax.f32 %v1824_v56, %v1031_v23  ;;  %v1037_v24 = vmax.f32 %v1826_v57, %v1035_v22 }
 0x494   : > { %v1368_v25 = vpack.i.bf16 %v1037_v24, %v1036_v27 }
 0x496   : > { %1369 = vrot.lane.b32.xlu1 %v1368_v25, %s1471_s24 }
 0x508   : > { %v1370_v28 = vpop.permute.xlu1 %1369 }
 0x509   : > { %v1372_v1 = vunpack.i.h.bf16 %v1370_v28  ;;  %v1371_v29 = vunpack.i.l.bf16 %v1370_v28 }
 0x50b   : > { %v1044_v30 = vsel %vm410_vm1, %v1371_v29, %v1372_v1  ;;  %v1048_v31 = vsel %vm410_vm1, %v1372_v1, %v1371_v29 }
 0x50c   : > { %v1049_v32 = vmax.f32 %v1036_v27, %v1044_v30  ;;  %v1050_v33 = vmax.f32 %v1037_v24, %v1048_v31 }
 0x50e   : > { %1147 = vmatprep.mubr.f32.mxu0 %v1050_v33 }
 0x50f   : > { %1148 = vmatmul.mubr.f32.vlgmr.msra.gmra.mxu0 %v1049_v32 }
 0x5cf   : > { %v1313_v34 = vpop.f32.mrf.mxu0 }
 0x5d1   : > { %v1314_v35 = vpop.f32.mrf.mxu0 }
 0x5d2   : > { %v1315_v36 = vadd.f32 %v1314_v35, %v1313_v34 }
 0x5d4   : > { %1154 = vst.msk [vmem:[%s298_s23] sm:$0xff] %vm1153_vm11, %v1315_v36 }
 0x5d5   : > { %1419 = shalt.err (!%p1416_p3)
}
 0x5d6   : > { %s1420_s18 = scalar_lea.hbm %s1167_s10, 128  ;;  %s1424_s21 = scalar_lea.hbm %s1964_s8, 256 }
 0x5d7   : > { %p1421_p4 = scmp.ne.s32.totalorder %s1167_s10, %s1420_s18  ;;  %p1425_p9 = scmp.lt.s32.totalorder %s1167_s10, %s1964_s8 }
 0x5d8   : > { %p1426_p10 = scmp.lt.s32.totalorder %s1424_s21, %s1420_s18 }
 0x5d9   : > { %p1422_p7 = pnand %p1421_p4, %p1558_p5 }
 0x5da   : > { %p1427_p11 = por %p1426_p10, %p1425_p9 }
 0x5db   : > { %p1423_p8 = pneg %p1422_p7 }
 0x5dd   : > { %p1428_p12 = pnand %p1427_p11, %p1423_p8 }
 0x5df   : > { %1431 = shalt.err (!%p1428_p12)
}
 0x5e0   : > { %1316 = dma.vmem_to_hbm [thread:$0]  (%p1558_p5), %s1170_s25, 128, %s1167_s10, %s1156_s12  }
 0x5e1 PF: > { %p1322_p13 = scmp.ge.s32.totalorder %s1466_s30, 2  ;;  %s1181_s26 = sand.u32 1, %s1454_s27  }
 0x5e2   : > { %s1182_s22 = scalar_lea.sflag [#allocation4], %s1181_s26 }
 0x5e3   : > { %p1319_p0 = pnand %p1322_p13, %p1562_p6 }
 0x5e5   : > { %p1320_p1 = pneg %p1319_p0 }
 0x5e7   : > { %1449 = dma.done.wait (%p1320_p1), %s1182_s22, 128  }
 0x5e8   : > { %1451 = vsyncadd (%p1320_p1), %s1182_s22, 4294967168  ;;  %p18_p2 = scmp.ge.s32.totalorder %s1545_s11, 4   ;;  %s1983_s27 = smov %s1458_s28 }
 0x5e9   : > { %s1984_s28 = smov %s1462_s29  ;;  %s1985_s29 = smov %s1556_s14 }
 0x5ea   : > { %s1986_s30 = smov %s1545_s11  ;;  %20 = sbr.rel (!%p18_p2) target bundleno = 3 (0x3), region = 87 }
 0x5ef   :  { %1187 = vsyncpa [#allocation4], 1 }
 0x5f0   :  { %1189 = vsyncpa [#allocation4 + $0x1], 1 }

</bundles_post_ra>
